<compile_context>
chip_gen: v7x
topology: tpu7x:2x2x1
jax: 0.10.0
libtpu: 0.0.40
codegen_flags: <defaults>
</compile_context>

<pallas_src>
import functools

import jax
import jax.numpy as jnp
from jax.experimental import pallas as pl
from jax.experimental.pallas import tpu as pltpu

EPS = 1e-5


# ------------------------------ Pallas kernel -------------------------------
def _add_norm_kernel(x_ref, y_ref, gamma_ref, beta_ref, o_ref, *, h):
    # dropout(Y) + X  (dropout == identity in eval mode); accumulate in f32.
    z = x_ref[...].astype(jnp.float32) + y_ref[...].astype(jnp.float32)
    hp = z.shape[-1]
    if hp != h:
        # Lane-padded case: keep padded lanes at exactly zero so the sums below
        # (divided by the true H) stay exact.
        lane = jax.lax.broadcasted_iota(jnp.int32, z.shape, dimension=1)
        valid = lane < h
        z = jnp.where(valid, z, 0.0)
    inv_h = 1.0 / h
    # Two-pass moments: mean, then centered second moment (no cancellation).
    mean = jnp.sum(z, axis=-1, keepdims=True) * inv_h
    d = z - mean
    if hp != h:
        d = jnp.where(valid, d, 0.0)
    var = jnp.maximum(jnp.sum(d * d, axis=-1, keepdims=True) * inv_h, 0.0)
    inv = jax.lax.rsqrt(var + EPS)                      # EUP slot
    gamma = gamma_ref[...].astype(jnp.float32)          # (1, Hp), read once
    beta = beta_ref[...].astype(jnp.float32)            # (1, Hp), read once
    o_ref[...] = (d * inv * gamma + beta).astype(o_ref.dtype)


def _round_up(x, m):
    return ((x + m - 1) // m) * m


def _default_vmem_budget():
    # ~70% of physical VMEM per core: ~45 MiB on v7x, ~90 MiB on v5e/v6e.
    try:
        cap = int(pltpu.get_tpu_info().vmem_capacity_bytes)
        return max(32 * 1024 * 1024, int(0.70 * cap))
    except Exception:
        return 44 * 1024 * 1024   # conservative, safe on v7x's 64 MiB per TC


def add_norm(x, y, gamma, beta, *, row_tile=512, vmem_budget_bytes=None):
    """LayerNorm(y + x) over the last dim.  x, y: (B, S, H); gamma, beta: (H,)."""
    B, S, H = x.shape
    R = B * S
    itemsize = x.dtype.itemsize
    if vmem_budget_bytes is None:
        vmem_budget_bytes = _default_vmem_budget()

    # Lane padding: only when H is close to the next multiple of 128 (<=15%
    # overhead).  Otherwise the block's last dim equals the full array dim H,
    # which is legal and keeps HBM traffic at exactly H lanes.
    if H % 128 == 0:
        Hp = H
    else:
        Hm = _round_up(H, 128)
        Hp = Hm if (Hm - H) <= 0.15 * Hm else H

    # Row (sublane) tile: multiple of 16 so both f32 and bf16 stay packed;
    # large by default to amortize the ~0.35 us per-grid-step overhead.
    SUB = 16
    rt = max(SUB, min(_round_up(row_tile, SUB), _round_up(R, SUB)))
    # Keep >=2 grid steps when possible so v7x's two TensorCores both get work.
    if R >= 2 * SUB:
        rt = min(rt, _round_up(-(-R // 2), SUB))

    # VMEM footprint of one pipelined step (double-buffered x, y, out tiles +
    # resident gamma/beta), using the physical lane rounding for safety.
    lanes = _round_up(Hp, 128)

    def tile_bytes(t):
        return 2 * (2 * t * lanes * itemsize + t * lanes * itemsize) + 4 * lanes * 4

    while rt > SUB and tile_bytes(rt) > vmem_budget_bytes:
        rt = max(SUB, _round_up(rt // 2, SUB))

    Rp = _round_up(R, rt)
    grid = (Rp // rt,)
    need_pad = (Rp != R) or (Hp != H)

    if need_pad:
        # Zero-fill the tail rows / lanes: per-row LayerNorm can't contaminate
        # valid rows, and zero rows produce finite (== beta) output.
        x2 = jnp.zeros((Rp, Hp), x.dtype).at[:R, :H].set(x.reshape(R, H))
        y2 = jnp.zeros((Rp, Hp), y.dtype).at[:R, :H].set(y.reshape(R, H))
    else:
        x2 = x.reshape(R, H)
        y2 = y.reshape(R, H)
    if Hp != H:
        g2 = jnp.zeros((1, Hp), gamma.dtype).at[:, :H].set(gamma.reshape(1, H))
        b2 = jnp.zeros((1, Hp), beta.dtype).at[:, :H].set(beta.reshape(1, H))
    else:
        g2 = gamma.reshape(1, H)
        b2 = beta.reshape(1, H)

    # tile_bytes already includes double buffering; just add headroom and cap
    # by the per-chip budget (well under v7x's 64 MiB physical per TC).
    vmem_limit = int(min(vmem_budget_bytes,
                         max(16 * 1024 * 1024, tile_bytes(rt) + 4 * 1024 * 1024)))

    out2 = pl.pallas_call(
        functools.partial(_add_norm_kernel, h=H),
        out_shape=jax.ShapeDtypeStruct((Rp, Hp), x.dtype),
        grid_spec=pltpu.PrefetchScalarGridSpec(
            num_scalar_prefetch=0,
            grid=grid,
            in_specs=[
                pl.BlockSpec((rt, Hp), lambda i: (i, 0)),   # X tile
                pl.BlockSpec((rt, Hp), lambda i: (i, 0)),   # Y tile
                pl.BlockSpec((1, Hp), lambda i: (0, 0)),    # gamma (resident)
                pl.BlockSpec((1, Hp), lambda i: (0, 0)),    # beta  (resident)
            ],
            out_specs=pl.BlockSpec((rt, Hp), lambda i: (i, 0)),
        ),
        compiler_params=pltpu.CompilerParams(
            dimension_semantics=("parallel",),   # row grid shards across 2 TCs on v7x
            vmem_limit_bytes=vmem_limit,
        ),
    )(x2, y2, g2, b2)

    if need_pad:
        return out2[:R, :H].reshape(B, S, H)
    return out2.reshape(B, S, H)


def add_norm_ref(x, y, gamma, beta):
    z = (y + x).astype(jnp.float32)
    mean = jnp.mean(z, axis=-1, keepdims=True)
    var = jnp.mean((z - mean) ** 2, axis=-1, keepdims=True)
    return ((z - mean) * jax.lax.rsqrt(var + EPS) * gamma + beta).astype(x.dtype)


# ----------------- DecoderBlock pieces (eval mode, plain JAX) ----------------
def _masked_softmax(scores, valid_lens):
    # scores: (B, heads, Q, K); valid_lens: (B,) int or None
    if valid_lens is None:
        return jax.nn.softmax(scores, axis=-1)
    k = scores.shape[-1]
    mask = jnp.arange(k, dtype=jnp.int32)[None, None, None, :] < \
        valid_lens.astype(jnp.int32)[:, None, None, None]
    scores = jnp.where(mask, scores, -1e6)
    return jax.nn.softmax(scores, axis=-1)


def _multi_head_attention(p, q, k, v, valid_lens, num_heads):
    def split_heads(t):
        b, s, h = t.shape
        return t.reshape(b, s, num_heads, h // num_heads).transpose(0, 2, 1, 3)

    Q = split_heads(q @ p["wq"])
    K = split_heads(k @ p["wk"])
    V = split_heads(v @ p["wv"])
    d = Q.shape[-1]
    scores = jnp.einsum("bhqd,bhkd->bhqk", Q, K) / jnp.sqrt(jnp.float32(d))
    attn = _masked_softmax(scores, valid_lens)   # attention dropout: identity (eval)
    out = jnp.einsum("bhqk,bhkd->bhqd", attn, V)
    b, h, s, dd = out.shape
    out = out.transpose(0, 2, 1, 3).reshape(b, s, h * dd)
    return out @ p["wo"]


def _position_wise_ffn(p, x):
    return jax.nn.relu(x @ p["w1"] + p["b1"]) @ p["w2"] + p["b2"]


def decoder_block(params, x, enc_outputs, enc_valid_lens, num_heads):
    # eval mode, first step: state[2][i] is None -> key_values = x;
    # dec_valid_lens = None.
    key_values = x
    x2 = _multi_head_attention(params["attn1"], x, key_values, key_values,
                               None, num_heads)
    y = add_norm(x, x2, params["ln1_g"], params["ln1_b"])
    y2 = _multi_head_attention(params["attn2"], y, enc_outputs, enc_outputs,
                               enc_valid_lens, num_heads)
    z = add_norm(y, y2, params["ln2_g"], params["ln2_b"])
    return add_norm(z, _position_wise_ffn(params["ffn"], z),
                    params["ln3_g"], params["ln3_b"])


# ----------------------------------- main ------------------------------------
if __name__ == "__main__":
    key = jax.random.PRNGKey(0)
    B, S, H, HEADS, FFN_H = 2, 8, 32, 8, 48

    ks = jax.random.split(key, 16)

    def w(k, shape, scale=0.1):
        return (scale * jax.random.normal(k, shape)).astype(jnp.float32)

    params = {
        "attn1": {"wq": w(ks[0], (H, H)), "wk": w(ks[1], (H, H)),
                  "wv": w(ks[2], (H, H)), "wo": w(ks[3], (H, H))},
        "attn2": {"wq": w(ks[4], (H, H)), "wk": w(ks[5], (H, H)),
                  "wv": w(ks[6], (H, H)), "wo": w(ks[7], (H, H))},
        "ffn": {"w1": w(ks[8], (H, FFN_H)), "b1": jnp.zeros((FFN_H,), jnp.float32),
                "w2": w(ks[9], (FFN_H, H)), "b2": jnp.zeros((H,), jnp.float32)},
        "ln1_g": jnp.ones((H,), jnp.float32), "ln1_b": jnp.zeros((H,), jnp.float32),
        "ln2_g": jnp.ones((H,), jnp.float32), "ln2_b": jnp.zeros((H,), jnp.float32),
        "ln3_g": jnp.ones((H,), jnp.float32), "ln3_b": jnp.zeros((H,), jnp.float32),
    }

    x = jax.random.normal(ks[10], (B, S, H), dtype=jnp.float32)
    enc_outputs = jax.random.normal(ks[11], (B, S, H), dtype=jnp.float32)
    enc_valid_lens = jnp.array([3, 2], dtype=jnp.int32)

    # --- correctness: Pallas AddNorm vs pure-JAX reference (random affine) ---
    xa = jax.random.normal(ks[12], (B, S, H), dtype=jnp.float32)
    ya = jax.random.normal(ks[13], (B, S, H), dtype=jnp.float32)
    gamma = 1.0 + 0.1 * jax.random.normal(ks[14], (H,), dtype=jnp.float32)
    beta = 0.1 * jax.random.normal(ks[15], (H,), dtype=jnp.float32)
    got = jax.block_until_ready(add_norm(xa, ya, gamma, beta))
    ref = add_norm_ref(xa, ya, gamma, beta)
    assert got.shape == (B, S, H)
    assert jnp.allclose(got, ref, atol=1e-5, rtol=1e-5), "AddNorm mismatch vs reference"

    # Also exercise the padded path (odd row count / near-128 hidden dim).
    B2, S2, H2 = 2, 9, 120
    xb = jax.random.normal(ks[12], (B2, S2, H2), dtype=jnp.float32)
    yb = jax.random.normal(ks[13], (B2, S2, H2), dtype=jnp.float32)
    gb = 1.0 + 0.1 * jax.random.normal(ks[14], (H2,), dtype=jnp.float32)
    bb = 0.1 * jax.random.normal(ks[15], (H2,), dtype=jnp.float32)
    got2 = jax.block_until_ready(add_norm(xb, yb, gb, bb))
    ref2 = add_norm_ref(xb, yb, gb, bb)
    assert jnp.allclose(got2, ref2, atol=1e-5, rtol=1e-5), "padded AddNorm mismatch"

    # --- full eval-mode DecoderBlock forward (three Pallas AddNorms inside) ---
    out = decoder_block(params, x, enc_outputs, enc_valid_lens, HEADS)
    out = jax.block_until_ready(out)
    assert out.shape == (B, S, H)
    assert bool(jnp.all(jnp.isfinite(out)))

    print("KERNEL_OK")
</pallas_src>

<mosaic_0001>
module attributes {stable_mosaic.version = 11 : i64} {
  func.func @_add_norm_kernel(%arg0: i32, %arg1: memref<16x32xf32, #tpu.memory_space<vmem>>, %arg2: memref<16x32xf32, #tpu.memory_space<vmem>>, %arg3: memref<1x32xf32, #tpu.memory_space<vmem>>, %arg4: memref<1x32xf32, #tpu.memory_space<vmem>>, %arg5: memref<16x32xf32, #tpu.memory_space<vmem>>) attributes {dimension_semantics = [#tpu.dimension_semantics<parallel>], iteration_bounds = array<i64: 1>, scalar_prefetch = 0 : i64, scratch_operands = 0 : i64, tpu.core_type = #tpu.core_type<tc>, window_params = [{transform_indices = @transform_0, window_bounds = array<i64: 16, 32>}, {transform_indices = @transform_1, window_bounds = array<i64: 16, 32>}, {pipeline_mode = #tpu.pipeline_mode<synchronous>, transform_indices = @transform_2, window_bounds = array<i64: 1, 32>}, {pipeline_mode = #tpu.pipeline_mode<synchronous>, transform_indices = @transform_3, window_bounds = array<i64: 1, 32>}, {transform_indices = @transform_4, window_bounds = array<i64: 16, 32>}]} {
    %c0 = arith.constant 0 : index
    %c0_0 = arith.constant 0 : index
    %0 = vector.load %arg1[%c0, %c0_0] : memref<16x32xf32, #tpu.memory_space<vmem>>, vector<16x32xf32>
    %c0_1 = arith.constant 0 : index
    %c0_2 = arith.constant 0 : index
    %1 = vector.load %arg2[%c0_1, %c0_2] : memref<16x32xf32, #tpu.memory_space<vmem>>, vector<16x32xf32>
    %2 = arith.addf %0, %1 : vector<16x32xf32>
    %cst = arith.constant dense<0.000000e+00> : vector<16xf32>
    %3 = vector.multi_reduction <add>, %2, %cst [1] : vector<16x32xf32> to vector<16xf32>
    %4 = vector.shape_cast %3 : vector<16xf32> to vector<16x1xf32>
    %cst_3 = arith.constant 3.125000e-02 : f32
    %5 = vector.broadcast %cst_3 : f32 to vector<16x1xf32>
    %6 = arith.mulf %4, %5 : vector<16x1xf32>
    %7 = vector.broadcast %6 : vector<16x1xf32> to vector<16x32xf32>
    %8 = arith.subf %2, %7 : vector<16x32xf32>
    %9 = arith.mulf %8, %8 : vector<16x32xf32>
    %cst_4 = arith.constant dense<0.000000e+00> : vector<16xf32>
    %10 = vector.multi_reduction <add>, %9, %cst_4 [1] : vector<16x32xf32> to vector<16xf32>
    %11 = vector.shape_cast %10 : vector<16xf32> to vector<16x1xf32>
    %cst_5 = arith.constant 3.125000e-02 : f32
    %12 = vector.broadcast %cst_5 : f32 to vector<16x1xf32>
    %13 = arith.mulf %11, %12 : vector<16x1xf32>
    %cst_6 = arith.constant 0.000000e+00 : f32
    %14 = vector.broadcast %cst_6 : f32 to vector<16x1xf32>
    %15 = arith.maximumf %13, %14 : vector<16x1xf32>
    %cst_7 = arith.constant 9.99999974E-6 : f32
    %16 = vector.broadcast %cst_7 : f32 to vector<16x1xf32>
    %17 = arith.addf %15, %16 : vector<16x1xf32>
    %18 = math.rsqrt %17 : vector<16x1xf32>
    %c0_8 = arith.constant 0 : index
    %c0_9 = arith.constant 0 : index
    %19 = vector.load %arg3[%c0_8, %c0_9] : memref<1x32xf32, #tpu.memory_space<vmem>>, vector<1x32xf32>
    %c0_10 = arith.constant 0 : index
    %c0_11 = arith.constant 0 : index
    %20 = vector.load %arg4[%c0_10, %c0_11] : memref<1x32xf32, #tpu.memory_space<vmem>>, vector<1x32xf32>
    %21 = vector.broadcast %18 : vector<16x1xf32> to vector<16x32xf32>
    %22 = arith.mulf %8, %21 : vector<16x32xf32>
    %23 = vector.broadcast %19 : vector<1x32xf32> to vector<16x32xf32>
    %24 = arith.mulf %22, %23 : vector<16x32xf32>
    %25 = vector.broadcast %20 : vector<1x32xf32> to vector<16x32xf32>
    %26 = arith.addf %24, %25 : vector<16x32xf32>
    %c0_12 = arith.constant 0 : index
    %c0_13 = arith.constant 0 : index
    %27 = vector.load %arg5[%c0_12, %c0_13] : memref<16x32xf32, #tpu.memory_space<vmem>>, vector<16x32xf32>
    tpu.vector_store %arg5[%c0_12, %c0_13], %26 {strides = array<i32>} : memref<16x32xf32, #tpu.memory_space<vmem>>, vector<16x32xf32>,
    return
  }
  func.func @transform_0(%arg0: i32) -> (i32, i32) {
    %c0_i32 = arith.constant 0 : i32
    %c0_i32_0 = arith.constant 0 : i32
    return %arg0, %c0_i32 : i32, i32
  }
  func.func @transform_1(%arg0: i32) -> (i32, i32) {
    %c0_i32 = arith.constant 0 : i32
    %c0_i32_0 = arith.constant 0 : i32
    return %arg0, %c0_i32 : i32, i32
  }
  func.func @transform_2(%arg0: i32) -> (i32, i32) {
    %c0_i32 = arith.constant 0 : i32
    %c0_i32_0 = arith.constant 0 : i32
    %c0_i32_1 = arith.constant 0 : i32
    return %c0_i32, %c0_i32_0 : i32, i32
  }
  func.func @transform_3(%arg0: i32) -> (i32, i32) {
    %c0_i32 = arith.constant 0 : i32
    %c0_i32_0 = arith.constant 0 : i32
    %c0_i32_1 = arith.constant 0 : i32
    return %c0_i32, %c0_i32_0 : i32, i32
  }
  func.func @transform_4(%arg0: i32) -> (i32, i32) {
    %c0_i32 = arith.constant 0 : i32
    %c0_i32_0 = arith.constant 0 : i32
    return %arg0, %c0_i32 : i32, i32
  }
}

</mosaic_0001>

<bundles_post_ra>
// kernel: tpu_custom_call.1
= control target key start
LH: loop header
LB: loop body
LE: loop exit
PB: predicated region body
PF: predicated region fallthrough
CT: control target
= control target key end

     0   :  { %9 = vsyncpa [#allocation3], 0  ;;  %s289_s0 = inlined_call_operand.hbm [shape: f32[16,32], index: 0, kind: input, shape index: {}]   ;;  %s290_s1 = inlined_call_operand.hbm [shape: f32[16,32], index: 1, kind: input, shape index: {}]   ;;  %s291_s2 = inlined_call_operand.vmem [shape: f32[1,32], index: 2, kind: input, shape index: {}]   ;;  %s292_s3 = inlined_call_operand.vmem [shape: f32[1,32], index: 3, kind: input, shape index: {}]   ;;  %s293_s4 = inlined_call_operand.hbm [shape: f32[16,32], index: 4, kind: output, shape index: {}]  }
   0x1   :  { %10 = vsyncpa [#allocation6], 0 }
   0x2   :  { %11 = vsyncpa [#allocation4], 0  ;;  %s202_s15 = smov [#allocation2]   ;;  %s130_s19 = scalar_lea.hbm %s289_s0, 256 }
   0x3   :  { %s17_s16 = sshll.u32 %s202_s15, 4  ;;  %p131_p0 = scmp.ne.s32.totalorder %s289_s0, %s130_s19  ;;  %s18_s16 = int_to_ptr.vmem [resolvable:$true] %s17_s16 }
   0x4   :  { %p134_p1 = scmp.lt.u32.totalorder %s130_s19, %s289_s0 }
   0x6   :  { %p136_p2 = pnand %p134_p1, %p131_p0 }
   0x8   :  { %139 = shalt.err (!%p136_p2)
}
   0x9   :  { %s140_s24 = scalar_lea.vmem %s18_s16, 256  ;;  %p145_p4 = scmp.lt.s32.totalorder %s18_s16, %s18_s16 }
   0xa   :  { %p141_p3 = scmp.ne.s32.totalorder %s18_s16, %s140_s24  ;;  %p146_p5 = scmp.lt.s32.totalorder %s140_s24, %s140_s24 }
   0xc   :  { %p147_p6 = por %p146_p5, %p145_p4 }
   0xe   :  { %p148_p7 = pnand %p147_p6, %p141_p3 }
  0x10   :  { %151 = shalt.err (!%p148_p7)
}
  0x11   :  { %s203_s25 = smov 128   ;;  %s204_s26 = smov 8  }
  0x12   :  { %23 = dma.hbm_to_vmem [thread:$0]  %s289_s0, 256, %s18_s16, [#allocation3], %s203_s25, %s203_s25, %s204_s26  }
  0x13   :  { %s205_s29 = smov [#allocation5]   ;;  %s152_s7 = scalar_lea.hbm %s290_s1, 256 }
  0x14   :  { %s29_s30 = sshll.u32 %s205_s29, 4  ;;  %p153_p8 = scmp.ne.s32.totalorder %s290_s1, %s152_s7  ;;  %s30_s30 = int_to_ptr.vmem [resolvable:$true] %s29_s30 }
  0x15   :  { %p156_p9 = scmp.lt.u32.totalorder %s152_s7, %s290_s1 }
  0x17   :  { %p158_p10 = pnand %p156_p9, %p153_p8 }
  0x19   :  { %161 = shalt.err (!%p158_p10)
}
  0x1a   :  { %s162_s12 = scalar_lea.vmem %s30_s30, 256  ;;  %p167_p12 = scmp.lt.s32.totalorder %s30_s30, %s30_s30 }
  0x1b   :  { %p163_p11 = scmp.ne.s32.totalorder %s30_s30, %s162_s12  ;;  %p168_p13 = scmp.lt.s32.totalorder %s162_s12, %s162_s12 }
  0x1d   :  { %p169_p0 = por %p168_p13, %p167_p12 }
  0x1f   :  { %p170_p1 = pnand %p169_p0, %p163_p11 }
  0x21   :  { %173 = shalt.err (!%p170_p1)
}
  0x22   :  { %35 = dma.hbm_to_vmem [thread:$0]  %s290_s1, 256, %s30_s30, [#allocation6], %s203_s25, %s203_s25, %s204_s26  }
  0x23   :  { %196 = dma.done.wait [#allocation3], 256  }
  0x24   :  { %197 = vsyncadd [#allocation3], 4294967040 }
  0x25   :  { %198 = dma.done.wait [#allocation6], 256  }
  0x26   :  { %199 = vsyncadd [#allocation6], 4294967040  ;;  %v46_v0 = vld [vmem:[#allocation2] sm:$0xff]  ;;  %v48_v1 = vld [vmem:[#allocation5] sm:$0xff]  ;;  %vm52_vm0 = vcmask 261120   ;;  %s206_s17 = smov [#allocation7]  }
  0x27   :  { %v47_v2 = vld [vmem:[#allocation2 + $0x8] sm:$0xff]  ;;  %v50_v3 = vadd.f32 %v48_v1, %v46_v0  ;;  %v49_v4 = vld [vmem:[#allocation5 + $0x8] sm:$0xff]  ;;  %v119_v27 = vld [vmem:[%s291_s2] ss:$0 sm:$0xff]  ;;  %s106_s18 = sshll.u32 %s206_s17, 4  ;;  %s107_s18 = int_to_ptr.vmem [resolvable:$true] %s106_s18 }
  0x28   :  { %v51_v5 = vadd.f32 %v49_v4, %v47_v2  ;;  %v120_v29 = vld [vmem:[%s292_s3] ss:$0 sm:$0xff]  ;;  %s174_s19 = scalar_lea.vmem %s107_s18, 256  ;;  %p179_p3 = scmp.lt.s32.totalorder %s107_s18, %s107_s18 }
  0x29   :  { %v53_v6 = vsel %vm52_vm0, %v50_v3, 0.0  ;;  %p175_p2 = scmp.ne.s32.totalorder %s107_s18, %s174_s19  ;;  %p180_p4 = scmp.lt.s32.totalorder %s174_s19, %s174_s19 }
  0x2a   :  { %54 = vadd.xlane.f32.xlu0 %v53_v6  ;;  %v56_v7 = vsel %vm52_vm0, %v51_v5, 0.0 }
  0x2b   :  { %p181_p5 = por %p180_p4, %p179_p3 }
  0x2d   :  { %p182_p6 = pnand %p181_p5, %p175_p2 }
  0x2e   :  { %57 = vadd.xlane.f32.xlu0 %v56_v7 }
  0xb7   :  { %v55_v8 = vpop.xlane.xlu0 %54 }
  0xb8   :  { %v59_v9 = vmul.f32 0.03125, %v55_v8 }
  0xba   :  { %v61_v10 = vsub.f32 %v50_v3, %v59_v9 }
  0xbb   :  { %v58_v11 = vpop.xlane.xlu0 %57 }
  0xbc   :  { %v60_v12 = vmul.f32 0.03125, %v58_v11  ;;  %v63_v13 = vmul.f32 %v61_v10, %v61_v10 }
  0xbe   :  { %v62_v14 = vsub.f32 %v51_v5, %v60_v12  ;;  %v65_v15 = vsel %vm52_vm0, %v63_v13, 0.0 }
  0xbf   :  { %66 = vadd.xlane.f32.xlu1 %v65_v15 }
  0xc0   :  { %v64_v16 = vmul.f32 %v62_v14, %v62_v14 }
  0xc2   :  { %v68_v17 = vsel %vm52_vm0, %v64_v16, 0.0 }
  0xc3   :  { %69 = vadd.xlane.f32.xlu1 %v68_v17 }
 0x14c   :  { %v67_v18 = vpop.xlane.xlu1 %66 }
 0x14d   :  { %v71_v19 = vmul.f32 0.03125, %v67_v18 }
 0x14f   :  { %v73_v20 = vmax.f32 %v71_v19, 0.0 }
 0x150   :  { %v70_v21 = vpop.xlane.xlu1 %69 }
 0x151   :  { %v75_v22 = vadd.f32 1e-05, %v73_v20  ;;  %v72_v23 = vmul.f32 0.03125, %v70_v21 }
 0x153   :  { %126 = vrsqrt.f32 %v75_v22  ;;  %v74_v24 = vmax.f32 %v72_v23, 0.0 }
 0x155   :  { %v76_v25 = vadd.f32 1e-05, %v74_v24 }
 0x157   :  { %128 = vrsqrt.f32 %v76_v25 }
 0x15d   :  { %v127_v26 = vpop.eup %126 }
 0x15e   :  { %v81_v28 = vmul.f32 %v127_v26, %v61_v10 }
 0x160   :  { %v89_v30 = vmul.f32 %v119_v27, %v81_v28 }
 0x161   :  { %v129_v31 = vpop.eup %128 }
 0x162   :  { %v82_v32 = vmul.f32 %v129_v31, %v62_v14  ;;  %v97_v33 = vadd.f32 %v120_v29, %v89_v30 }
 0x164   :  { %v90_v34 = vmul.f32 %v119_v27, %v82_v32  ;;  %99 = vst.msk [vmem:[#allocation7] sm:$0xff] %vm52_vm0, %v97_v33 }
 0x166   :  { %v98_v35 = vadd.f32 %v120_v29, %v90_v34 }
 0x168   :  { %100 = vst.msk [vmem:[#allocation7 + $0x8] sm:$0xff] %vm52_vm0, %v98_v35 }
 0x169   :  { %185 = shalt.err (!%p182_p6)
}
 0x16a   :  { %s186_s20 = scalar_lea.hbm %s293_s4, 256 }
 0x16b   :  { %p187_p7 = scmp.ne.s32.totalorder %s293_s4, %s186_s20  ;;  %p190_p8 = scmp.lt.u32.totalorder %s186_s20, %s293_s4 }
 0x16d   :  { %p192_p9 = pnand %p190_p8, %p187_p7 }
 0x16f   :  { %195 = shalt.err (!%p192_p9)
}
 0x170   :  { %112 = dma.vmem_to_hbm [thread:$0]  %s107_s18, 256, %s293_s4, [#allocation4], %s203_s25, %s203_s25, %s204_s26  }
 0x171   :  { %200 = dma.done.wait [#allocation4], 256  }
 0x172   :  { %201 = vsyncadd [#allocation4], 4294967040 }
 0x173   :  { %116 = vsyncpa [#allocation3], 1 }
 0x174   :  { %117 = vsyncpa [#allocation6], 1 }
 0x175   :  { %118 = vsyncpa [#allocation4], 1 }

</bundles_post_ra>
